<compile_context>
chip_gen: v7x
topology: tpu7x:2x2x1
jax: 0.10.0
libtpu: 0.0.40
codegen_flags: <defaults>
</compile_context>

<pallas_src>
import jax
import jax.numpy as jnp
from jax.experimental import pallas as pl
from jax.experimental.pallas import tpu as pltpu

LANES = 128      # TPU lane width
SUBLANES = 8     # TPU sublane granularity


def _round_up(x, m):
    return ((x + m - 1) // m) * m


def _cdiv(a, b):
    return (a + b - 1) // b


def vae_kernel(x_ref, eps_ref,
               w1_ref, b1_ref,
               wh_ref, bh_ref,
               w3_ref, b3_ref,
               w4_ref, b4_ref,
               recon_ref, mustd_ref):
    mm_dtype = w1_ref.dtype  # matmul operand dtype (f32 or bf16)

    # ---- encoder -----------------------------------------------------------
    # fc1 (no activation); x / w1 already lane-padded to idim_p.
    h = jnp.dot(x_ref[...], w1_ref[...],
                preferred_element_type=jnp.float32) + b1_ref[...]
    # Fused fc21 | fc22 heads, zero-padded to head_w lanes:
    # lanes [0, hdim) = mu, lanes [hdim, 2*hdim) = std, rest = 0.
    mu_std = jnp.dot(h.astype(mm_dtype), wh_ref[...],
                     preferred_element_type=jnp.float32) + bh_ref[...]

    # ---- reparameterization (packed, fully lane-dense) ----------------------
    # eps_ref lanes: [0,hdim)=1, [hdim,2hdim)=eps, rest=0
    #   -> z_packed = [mu | eps*std | 0]
    z_packed = mu_std * eps_ref[...]

    # ---- decoder -----------------------------------------------------------
    # W3' = [W3; W3; 0]  =>  z_packed @ W3' == (eps*std + mu) @ W3
    h3 = jnp.tanh(jnp.dot(z_packed.astype(mm_dtype), w3_ref[...],
                          preferred_element_type=jnp.float32) + b3_ref[...])
    logits = jnp.dot(h3.astype(mm_dtype), w4_ref[...],
                     preferred_element_type=jnp.float32) + b4_ref[...]

    # sigmoid(x) == 0.5*tanh(0.5*x) + 0.5 : single EUP op per element.
    recon = 0.5 * jnp.tanh(0.5 * logits) + 0.5

    # Lane-dense stores (last dims are multiples of 128 -> unmasked vst).
    recon_ref[...] = recon.astype(recon_ref.dtype)
    mustd_ref[...] = mu_std.astype(mustd_ref.dtype)


def init_linear(key, in_dim, out_dim):
    """PyTorch-style uniform Linear init; W returned as [in, out] (transposed),
    b as [1, out]."""
    kw, kb = jax.random.split(key)
    bound = 1.0 / (in_dim ** 0.5)
    w = jax.random.uniform(kw, (in_dim, out_dim), jnp.float32, -bound, bound)
    b = jax.random.uniform(kb, (1, out_dim), jnp.float32, -bound, bound)
    return w, b


def make_vae_params(key, idim, hdim):
    keys = jax.random.split(key, 5)
    w1, b1 = init_linear(keys[0], idim, 128)
    w21, b21 = init_linear(keys[1], 128, hdim)
    w22, b22 = init_linear(keys[2], 128, hdim)
    w3, b3 = init_linear(keys[3], hdim, 128)
    w4, b4 = init_linear(keys[4], 128, idim)
    return (w1, b1, w21, b21, w22, b22, w3, b3, w4, b4)


def vae_forward(x, eps, params, *, batch_tile=None, use_bf16=False):
    """Returns (recon, mu, std) exactly like VAE.forward (eps supplied)."""
    B, idim = x.shape
    hdim = eps.shape[1]
    w1, b1, w21, b21, w22, b22, w3, b3, w4, b4 = params

    # ---- fuse + pad weights so every operand / output is lane-dense ---------
    head_w = _round_up(2 * hdim, LANES)                     # packed mu|std width
    idim_p = _round_up(idim, LANES)                         # padded x / recon width

    # fc1: pad input rows to idim_p (x lanes padded with zeros to match).
    w1p = jnp.pad(w1, ((0, idim_p - idim), (0, 0)))         # [idim_p, 128]

    # fused fc21|fc22 head.
    wh = jnp.pad(jnp.concatenate([w21, w22], axis=1),
                 ((0, 0), (0, head_w - 2 * hdim)))          # [128, head_w]
    bh = jnp.pad(jnp.concatenate([b21, b22], axis=1),
                 ((0, 0), (0, head_w - 2 * hdim)))          # [1, head_w]

    # fc3 in packed layout: rows [0,hdim)=W3 (for mu), [hdim,2hdim)=W3 (for
    # eps*std), rest zero.
    w3p = jnp.pad(jnp.concatenate([w3, w3], axis=0),
                  ((0, head_w - 2 * hdim), (0, 0)))         # [head_w, 128]

    # fc4: pad output lanes to idim_p.
    w4p = jnp.pad(w4, ((0, 0), (0, idim_p - idim)))         # [128, idim_p]
    b4p = jnp.pad(b4, ((0, 0), (0, idim_p - idim)))         # [1, idim_p]

    # ---- pad x lanes + build packed eps slab ---------------------------------
    xp = jnp.pad(x, ((0, 0), (0, idim_p - idim)))           # [B, idim_p]
    eps_packed = jnp.concatenate(
        [jnp.ones((B, hdim), jnp.float32),                  # mu lanes pass through
         eps.astype(jnp.float32),                           # std lanes scaled by eps
         jnp.zeros((B, head_w - 2 * hdim), jnp.float32)],   # pad lanes killed
        axis=1)                                             # [B, head_w]

    # ---- batch tiling --------------------------------------------------------
    if batch_tile is None:
        # Aim for >= 2 grid steps (v7x megacore sharding), tile capped at 512
        # rows; on v5e/v6e larger batches still get big (512-row) tiles.
        tb = min(512, max(SUBLANES, _round_up(_cdiv(B, 2), SUBLANES)))
    else:
        tb = max(SUBLANES, _round_up(batch_tile, SUBLANES))
    Bp = _round_up(B, tb)
    if Bp != B:
        xp = jnp.pad(xp, ((0, Bp - B), (0, 0)))
        eps_packed = jnp.pad(eps_packed, ((0, Bp - B), (0, 0)))
    grid = (Bp // tb,)

    # ---- optional bf16 matmul operands ---------------------------------------
    if use_bf16:
        mm = jnp.bfloat16
        xp = xp.astype(mm)
        w1p, wh, w3p, w4p = (a.astype(mm) for a in (w1p, wh, w3p, w4p))
    # biases / eps stay f32; accumulation is always f32.

    batch_spec = lambda dim: pl.BlockSpec((tb, dim), lambda i: (i, 0))
    const_spec = lambda shape: pl.BlockSpec(shape, lambda i: (0, 0))

    in_specs = [
        batch_spec(idim_p),               # x (lane-padded)
        batch_spec(head_w),               # eps_packed
        const_spec(w1p.shape),            # w1p  [idim_p, 128]
        const_spec(b1.shape),             # b1   [1, 128]
        const_spec(wh.shape),             # wh   [128, head_w]
        const_spec(bh.shape),             # bh   [1, head_w]
        const_spec(w3p.shape),            # w3p  [head_w, 128]
        const_spec(b3.shape),             # b3   [1, 128]
        const_spec(w4p.shape),            # w4p  [128, idim_p]
        const_spec(b4p.shape),            # b4p  [1, idim_p]
    ]
    out_specs = (
        batch_spec(idim_p),               # recon (padded)
        batch_spec(head_w),               # packed mu|std (padded)
    )
    out_shapes = (
        jax.ShapeDtypeStruct((Bp, idim_p), jnp.float32),
        jax.ShapeDtypeStruct((Bp, head_w), jnp.float32),
    )

    flops = 2 * Bp * (idim_p * 128 + 128 * head_w + head_w * 128 + 128 * idim_p)
    transcendentals = Bp * (128 + idim_p)  # fc3 tanh + sigmoid-as-tanh
    itemsize = 2 if use_bf16 else 4
    bytes_accessed = (itemsize * (xp.size + w1p.size + wh.size + w3p.size + w4p.size)
                      + 4 * (eps_packed.size + b1.size + bh.size + b3.size + b4p.size)
                      + 4 * (Bp * idim_p + Bp * head_w))

    recon_p, mustd_p = pl.pallas_call(
        vae_kernel,
        out_shape=out_shapes,
        grid=grid,
        in_specs=in_specs,
        out_specs=out_specs,
        compiler_params=pltpu.CompilerParams(
            dimension_semantics=("parallel",),
            # Explicit limit: covers double-buffered streamed tiles + resident
            # weights; stays below v7x's 64 MiB physical VMEM per TC.
            vmem_limit_bytes=48 * 1024 * 1024),
        cost_estimate=pl.CostEstimate(
            flops=int(flops),
            transcendentals=int(transcendentals),
            bytes_accessed=int(bytes_accessed)),
    )(xp, eps_packed, w1p, b1, wh, bh, w3p, b3, w4p, b4p)

    # Split / un-pad outside the kernel (cheap XLA slices).
    recon = recon_p[:B, :idim]
    mu = mustd_p[:B, :hdim]
    std = mustd_p[:B, hdim:2 * hdim]
    return recon, mu, std


if __name__ == "__main__":
    # Small shapes consistent with the module: batch=8, idim=32, hdim=16.
    B, idim, hdim = 8, 32, 16

    key = jax.random.PRNGKey(0)
    k_x, k_eps, k_params = jax.random.split(key, 3)

    x = jax.random.normal(k_x, (B, idim), dtype=jnp.float32)
    eps = jax.random.normal(k_eps, (B, hdim), dtype=jnp.float32)
    params = make_vae_params(k_params, idim, hdim)

    recon, mu, std = jax.block_until_ready(vae_forward(x, eps, params))

    # Reference check in plain JAX (same math, outside the kernel).
    w1, b1, w21, b21, w22, b22, w3, b3, w4, b4 = params
    h_ref = x @ w1 + b1
    mu_ref = h_ref @ w21 + b21
    std_ref = h_ref @ w22 + b22
    z_ref = eps * std_ref + mu_ref
    recon_ref = jax.nn.sigmoid(jnp.tanh(z_ref @ w3 + b3) @ w4 + b4)

    assert recon.shape == (B, idim) and mu.shape == (B, hdim) and std.shape == (B, hdim)
    assert jnp.allclose(recon, recon_ref, atol=1e-4)
    assert jnp.allclose(mu, mu_ref, atol=1e-4)
    assert jnp.allclose(std, std_ref, atol=1e-4)

    print("KERNEL_OK")
</pallas_src>

<mosaic_0001>
module attributes {stable_mosaic.version = 11 : i64} {
  func.func @vae_kernel(%arg0: i32, %arg1: memref<8x128xf32, #tpu.memory_space<vmem>>, %arg2: memref<8x128xf32, #tpu.memory_space<vmem>>, %arg3: memref<128x128xf32, #tpu.memory_space<vmem>>, %arg4: memref<1x128xf32, #tpu.memory_space<vmem>>, %arg5: memref<128x128xf32, #tpu.memory_space<vmem>>, %arg6: memref<1x128xf32, #tpu.memory_space<vmem>>, %arg7: memref<128x128xf32, #tpu.memory_space<vmem>>, %arg8: memref<1x128xf32, #tpu.memory_space<vmem>>, %arg9: memref<128x128xf32, #tpu.memory_space<vmem>>, %arg10: memref<1x128xf32, #tpu.memory_space<vmem>>, %arg11: memref<8x128xf32, #tpu.memory_space<vmem>>, %arg12: memref<8x128xf32, #tpu.memory_space<vmem>>) attributes {dimension_semantics = [#tpu.dimension_semantics<parallel>], iteration_bounds = array<i64: 1>, scalar_prefetch = 0 : i64, scratch_operands = 0 : i64, tpu.core_type = #tpu.core_type<tc>, window_params = [{transform_indices = @transform_0, window_bounds = array<i64: 8, 128>}, {transform_indices = @transform_1, window_bounds = array<i64: 8, 128>}, {pipeline_mode = #tpu.pipeline_mode<synchronous>, transform_indices = @transform_2, window_bounds = array<i64: 128, 128>}, {pipeline_mode = #tpu.pipeline_mode<synchronous>, transform_indices = @transform_3, window_bounds = array<i64: 1, 128>}, {pipeline_mode = #tpu.pipeline_mode<synchronous>, transform_indices = @transform_4, window_bounds = array<i64: 128, 128>}, {pipeline_mode = #tpu.pipeline_mode<synchronous>, transform_indices = @transform_5, window_bounds = array<i64: 1, 128>}, {pipeline_mode = #tpu.pipeline_mode<synchronous>, transform_indices = @transform_6, window_bounds = array<i64: 128, 128>}, {pipeline_mode = #tpu.pipeline_mode<synchronous>, transform_indices = @transform_7, window_bounds = array<i64: 1, 128>}, {pipeline_mode = #tpu.pipeline_mode<synchronous>, transform_indices = @transform_8, window_bounds = array<i64: 128, 128>}, {pipeline_mode = #tpu.pipeline_mode<synchronous>, transform_indices = @transform_9, window_bounds = array<i64: 1, 128>}, {transform_indices = @transform_10, window_bounds = array<i64: 8, 128>}, {transform_indices = @transform_11, window_bounds = array<i64: 8, 128>}]} {
    %c0 = arith.constant 0 : index
    %c0_0 = arith.constant 0 : index
    %0 = vector.load %arg1[%c0, %c0_0] : memref<8x128xf32, #tpu.memory_space<vmem>>, vector<8x128xf32>
    %c0_1 = arith.constant 0 : index
    %c0_2 = arith.constant 0 : index
    %1 = vector.load %arg3[%c0_1, %c0_2] : memref<128x128xf32, #tpu.memory_space<vmem>>, vector<128x128xf32>
    %cst = arith.constant dense<0.000000e+00> : vector<8x128xf32>
    %2 = tpu.matmul %0, %1, %cst {dimension_numbers = #tpu.dot_dimension_numbers<[1], [0], [0], [1], [0, 0, 1, 1], [], []>} : vector<8x128xf32>, vector<128x128xf32>, vector<8x128xf32> -> vector<8x128xf32>
    %c0_3 = arith.constant 0 : index
    %c0_4 = arith.constant 0 : index
    %3 = vector.load %arg4[%c0_3, %c0_4] : memref<1x128xf32, #tpu.memory_space<vmem>>, vector<1x128xf32>
    %4 = vector.broadcast %3 : vector<1x128xf32> to vector<8x128xf32>
    %5 = arith.addf %2, %4 : vector<8x128xf32>
    %c0_5 = arith.constant 0 : index
    %c0_6 = arith.constant 0 : index
    %6 = vector.load %arg5[%c0_5, %c0_6] : memref<128x128xf32, #tpu.memory_space<vmem>>, vector<128x128xf32>
    %cst_7 = arith.constant dense<0.000000e+00> : vector<8x128xf32>
    %7 = tpu.matmul %5, %6, %cst_7 {dimension_numbers = #tpu.dot_dimension_numbers<[1], [0], [0], [1], [0, 0, 1, 1], [], []>} : vector<8x128xf32>, vector<128x128xf32>, vector<8x128xf32> -> vector<8x128xf32>
    %c0_8 = arith.constant 0 : index
    %c0_9 = arith.constant 0 : index
    %8 = vector.load %arg6[%c0_8, %c0_9] : memref<1x128xf32, #tpu.memory_space<vmem>>, vector<1x128xf32>
    %9 = vector.broadcast %8 : vector<1x128xf32> to vector<8x128xf32>
    %10 = arith.addf %7, %9 : vector<8x128xf32>
    %c0_10 = arith.constant 0 : index
    %c0_11 = arith.constant 0 : index
    %11 = vector.load %arg2[%c0_10, %c0_11] : memref<8x128xf32, #tpu.memory_space<vmem>>, vector<8x128xf32>
    %12 = arith.mulf %10, %11 : vector<8x128xf32>
    %c0_12 = arith.constant 0 : index
    %c0_13 = arith.constant 0 : index
    %13 = vector.load %arg7[%c0_12, %c0_13] : memref<128x128xf32, #tpu.memory_space<vmem>>, vector<128x128xf32>
    %cst_14 = arith.constant dense<0.000000e+00> : vector<8x128xf32>
    %14 = tpu.matmul %12, %13, %cst_14 {dimension_numbers = #tpu.dot_dimension_numbers<[1], [0], [0], [1], [0, 0, 1, 1], [], []>} : vector<8x128xf32>, vector<128x128xf32>, vector<8x128xf32> -> vector<8x128xf32>
    %c0_15 = arith.constant 0 : index
    %c0_16 = arith.constant 0 : index
    %15 = vector.load %arg8[%c0_15, %c0_16] : memref<1x128xf32, #tpu.memory_space<vmem>>, vector<1x128xf32>
    %16 = vector.broadcast %15 : vector<1x128xf32> to vector<8x128xf32>
    %17 = arith.addf %14, %16 : vector<8x128xf32>
    %18 = math.tanh %17 : vector<8x128xf32>
    %c0_17 = arith.constant 0 : index
    %c0_18 = arith.constant 0 : index
    %19 = vector.load %arg9[%c0_17, %c0_18] : memref<128x128xf32, #tpu.memory_space<vmem>>, vector<128x128xf32>
    %cst_19 = arith.constant dense<0.000000e+00> : vector<8x128xf32>
    %20 = tpu.matmul %18, %19, %cst_19 {dimension_numbers = #tpu.dot_dimension_numbers<[1], [0], [0], [1], [0, 0, 1, 1], [], []>} : vector<8x128xf32>, vector<128x128xf32>, vector<8x128xf32> -> vector<8x128xf32>
    %c0_20 = arith.constant 0 : index
    %c0_21 = arith.constant 0 : index
    %21 = vector.load %arg10[%c0_20, %c0_21] : memref<1x128xf32, #tpu.memory_space<vmem>>, vector<1x128xf32>
    %22 = vector.broadcast %21 : vector<1x128xf32> to vector<8x128xf32>
    %23 = arith.addf %20, %22 : vector<8x128xf32>
    %cst_22 = arith.constant 5.000000e-01 : f32
    %24 = vector.broadcast %cst_22 : f32 to vector<8x128xf32>
    %25 = arith.mulf %24, %23 : vector<8x128xf32>
    %26 = math.tanh %25 : vector<8x128xf32>
    %cst_23 = arith.constant 5.000000e-01 : f32
    %27 = vector.broadcast %cst_23 : f32 to vector<8x128xf32>
    %28 = arith.mulf %27, %26 : vector<8x128xf32>
    %cst_24 = arith.constant 5.000000e-01 : f32
    %29 = vector.broadcast %cst_24 : f32 to vector<8x128xf32>
    %30 = arith.addf %28, %29 : vector<8x128xf32>
    %c0_25 = arith.constant 0 : index
    %c0_26 = arith.constant 0 : index
    %31 = vector.load %arg11[%c0_25, %c0_26] : memref<8x128xf32, #tpu.memory_space<vmem>>, vector<8x128xf32>
    tpu.vector_store %arg11[%c0_25, %c0_26], %30 {strides = array<i32>} : memref<8x128xf32, #tpu.memory_space<vmem>>, vector<8x128xf32>,
    %c0_27 = arith.constant 0 : index
    %c0_28 = arith.constant 0 : index
    %32 = vector.load %arg12[%c0_27, %c0_28] : memref<8x128xf32, #tpu.memory_space<vmem>>, vector<8x128xf32>
    tpu.vector_store %arg12[%c0_27, %c0_28], %10 {strides = array<i32>} : memref<8x128xf32, #tpu.memory_space<vmem>>, vector<8x128xf32>,
    return
  }
  func.func @transform_0(%arg0: i32) -> (i32, i32) {
    %c0_i32 = arith.constant 0 : i32
    %c0_i32_0 = arith.constant 0 : i32
    return %arg0, %c0_i32 : i32, i32
  }
  func.func @transform_1(%arg0: i32) -> (i32, i32) {
    %c0_i32 = arith.constant 0 : i32
    %c0_i32_0 = arith.constant 0 : i32
    return %arg0, %c0_i32 : i32, i32
  }
  func.func @transform_2(%arg0: i32) -> (i32, i32) {
    %c0_i32 = arith.constant 0 : i32
    %c0_i32_0 = arith.constant 0 : i32
    %c0_i32_1 = arith.constant 0 : i32
    return %c0_i32, %c0_i32_0 : i32, i32
  }
  func.func @transform_3(%arg0: i32) -> (i32, i32) {
    %c0_i32 = arith.constant 0 : i32
    %c0_i32_0 = arith.constant 0 : i32
    %c0_i32_1 = arith.constant 0 : i32
    return %c0_i32, %c0_i32_0 : i32, i32
  }
  func.func @transform_4(%arg0: i32) -> (i32, i32) {
    %c0_i32 = arith.constant 0 : i32
    %c0_i32_0 = arith.constant 0 : i32
    %c0_i32_1 = arith.constant 0 : i32
    return %c0_i32, %c0_i32_0 : i32, i32
  }
  func.func @transform_5(%arg0: i32) -> (i32, i32) {
    %c0_i32 = arith.constant 0 : i32
    %c0_i32_0 = arith.constant 0 : i32
    %c0_i32_1 = arith.constant 0 : i32
    return %c0_i32, %c0_i32_0 : i32, i32
  }
  func.func @transform_6(%arg0: i32) -> (i32, i32) {
    %c0_i32 = arith.constant 0 : i32
    %c0_i32_0 = arith.constant 0 : i32
    %c0_i32_1 = arith.constant 0 : i32
    return %c0_i32, %c0_i32_0 : i32, i32
  }
  func.func @transform_7(%arg0: i32) -> (i32, i32) {
    %c0_i32 = arith.constant 0 : i32
    %c0_i32_0 = arith.constant 0 : i32
    %c0_i32_1 = arith.constant 0 : i32
    return %c0_i32, %c0_i32_0 : i32, i32
  }
  func.func @transform_8(%arg0: i32) -> (i32, i32) {
    %c0_i32 = arith.constant 0 : i32
    %c0_i32_0 = arith.constant 0 : i32
    %c0_i32_1 = arith.constant 0 : i32
    return %c0_i32, %c0_i32_0 : i32, i32
  }
  func.func @transform_9(%arg0: i32) -> (i32, i32) {
    %c0_i32 = arith.constant 0 : i32
    %c0_i32_0 = arith.constant 0 : i32
    %c0_i32_1 = arith.constant 0 : i32
    return %c0_i32, %c0_i32_0 : i32, i32
  }
  func.func @transform_10(%arg0: i32) -> (i32, i32) {
    %c0_i32 = arith.constant 0 : i32
    %c0_i32_0 = arith.constant 0 : i32
    return %arg0, %c0_i32 : i32, i32
  }
  func.func @transform_11(%arg0: i32) -> (i32, i32) {
    %c0_i32 = arith.constant 0 : i32
    %c0_i32_0 = arith.constant 0 : i32
    return %arg0, %c0_i32 : i32, i32
  }
}

</mosaic_0001>

<bundles_post_ra>
// kernel: tpu_custom_call.1
= control target key start
LH: loop header
LB: loop body
LE: loop exit
PB: predicated region body
PF: predicated region fallthrough
CT: control target
= control target key end

     0   :  { %17 = vsyncpa [#allocation3], 0  ;;  %s1277_s0 = inlined_call_operand.hbm [shape: f32[8,128], index: 0, kind: input, shape index: {}]   ;;  %s1278_s1 = inlined_call_operand.hbm [shape: f32[8,128], index: 1, kind: input, shape index: {}]   ;;  %s1279_s2 = inlined_call_operand.hbm [shape: f32[128,128], index: 2, kind: input, shape index: {}]   ;;  %s1280_s3 = inlined_call_operand.vmem [shape: f32[1,128], index: 3, kind: input, shape index: {}]   ;;  %s1281_s4 = inlined_call_operand.hbm [shape: f32[128,128], index: 4, kind: input, shape index: {}]   ;;  %s1282_s5 = inlined_call_operand.vmem [shape: f32[1,128], index: 5, kind: input, shape index: {}]   ;;  %s1283_s6 = inlined_call_operand.hbm [shape: f32[128,128], index: 6, kind: input, shape index: {}]   ;;  %s1284_s7 = inlined_call_operand.vmem [shape: f32[1,128], index: 7, kind: input, shape index: {}]   ;;  %s1285_s8 = inlined_call_operand.hbm [shape: f32[128,128], index: 8, kind: input, shape index: {}]   ;;  %s1286_s9 = inlined_call_operand.vmem [shape: f32[1,128], index: 9, kind: input, shape index: {}]   ;;  %s1287_s10 = inlined_call_operand.hbm [shape: f32[8,128], index: 10, kind: output, shape index: {0}]   ;;  %s1288_s11 = inlined_call_operand.hbm [shape: f32[8,128], index: 11, kind: output, shape index: {1}]  }
   0x1   :  { %18 = vsyncpa [#allocation6], 0 }
   0x2   :  { %19 = vsyncpa [#allocation9], 0 }
   0x3   :  { %20 = vsyncpa [#allocation12], 0 }
   0x4   :  { %21 = vsyncpa [#allocation4], 0 }
   0x5   :  { %22 = vsyncpa [#allocation15], 0  ;;  %s1044_s17 = smov [#allocation5]   ;;  %s856_s21 = scalar_lea.hbm %s1278_s1, 128 }
   0x6   :  { %s39_s18 = sshll.u32 %s1044_s17, 4  ;;  %p857_p0 = scmp.ne.s32.totalorder %s1278_s1, %s856_s21  ;;  %s40_s18 = int_to_ptr.vmem [resolvable:$true] %s39_s18 }
   0x7   :  { %p860_p1 = scmp.lt.u32.totalorder %s856_s21, %s1278_s1 }
   0x9   :  { %p862_p2 = pnand %p860_p1, %p857_p0 }
   0xb   :  { %865 = shalt.err (!%p862_p2)
}
   0xc   :  { %s866_s26 = scalar_lea.vmem %s40_s18, 128  ;;  %p871_p4 = scmp.lt.s32.totalorder %s40_s18, %s40_s18 }
   0xd   :  { %p867_p3 = scmp.ne.s32.totalorder %s40_s18, %s866_s26  ;;  %p872_p5 = scmp.lt.s32.totalorder %s866_s26, %s866_s26 }
   0xf   :  { %p873_p6 = por %p872_p5, %p871_p4 }
  0x11   :  { %p874_p7 = pnand %p873_p6, %p867_p3 }
  0x13   :  { %877 = shalt.err (!%p874_p7)
}
  0x14   :  { %42 = dma.hbm_to_vmem [thread:$0]  %s1278_s1, 128, %s40_s18, [#allocation6]  }
  0x15   :  { %s1045_s29 = smov [#allocation8]   ;;  %s1046_s12 = smov [#allocation2]  }
  0x16   :  { %s62_s30 = sshll.u32 %s1045_s29, 4  ;;  %s29_s13 = sshll.u32 %s1046_s12, 4  ;;  %s63_s30 = int_to_ptr.vmem [resolvable:$true] %s62_s30  ;;  %s30_s13 = int_to_ptr.vmem [resolvable:$true] %s29_s13 }
  0x17   :  { %s878_s16 = scalar_lea.hbm %s1281_s4, 2048 }
  0x18   :  { %p879_p8 = scmp.ne.s32.totalorder %s1281_s4, %s878_s16  ;;  %p882_p9 = scmp.lt.u32.totalorder %s878_s16, %s1281_s4 }
  0x1a   :  { %p884_p10 = pnand %p882_p9, %p879_p8 }
  0x1c   :  { %887 = shalt.err (!%p884_p10)
}
  0x1d   :  { %s888_s1 = scalar_lea.vmem %s63_s30, 2048  ;;  %p893_p12 = scmp.lt.s32.totalorder %s63_s30, %s63_s30 }
  0x1e   :  { %p889_p11 = scmp.ne.s32.totalorder %s63_s30, %s888_s1  ;;  %p894_p13 = scmp.lt.s32.totalorder %s888_s1, %s888_s1 }
  0x20   :  { %p895_p0 = por %p894_p13, %p893_p12 }
  0x22   :  { %p896_p1 = pnand %p895_p0, %p889_p11 }
  0x24   :  { %899 = shalt.err (!%p896_p1)
}
  0x25   :  { %s1047_s18 = smov 128   ;;  %s1048_s22 = smov 8  }
  0x26   :  { %68 = dma.hbm_to_vmem [thread:$0]  %s1281_s4, 2048, %s63_s30, [#allocation9], %s1047_s18, %s1047_s18, %s1048_s22  }
  0x27   :  { %s900_s27 = scalar_lea.hbm %s1277_s0, 128 }
  0x28   :  { %p901_p2 = scmp.ne.s32.totalorder %s1277_s0, %s900_s27  ;;  %p904_p3 = scmp.lt.u32.totalorder %s900_s27, %s1277_s0 }
  0x2a   :  { %p906_p4 = pnand %p904_p3, %p901_p2 }
  0x2c   :  { %909 = shalt.err (!%p906_p4)
}
  0x2d   :  { %s910_s15 = scalar_lea.vmem %s30_s13, 128  ;;  %p915_p6 = scmp.lt.s32.totalorder %s30_s13, %s30_s13 }
  0x2e   :  { %p911_p5 = scmp.ne.s32.totalorder %s30_s13, %s910_s15  ;;  %p916_p7 = scmp.lt.s32.totalorder %s910_s15, %s910_s15 }
  0x30   :  { %p917_p8 = por %p916_p7, %p915_p6 }
  0x32   :  { %p918_p9 = pnand %p917_p8, %p911_p5 }
  0x34   :  { %921 = shalt.err (!%p918_p9)
}
  0x35   :  { %32 = dma.hbm_to_vmem [thread:$0]  %s1277_s0, 128, %s30_s13, [#allocation3]  }
  0x36   :  { %s1049_s16 = smov [#allocation7]   ;;  %s1050_s19 = smov [#allocation10]  }
  0x37   :  { %s48_s17 = sshll.u32 %s1049_s16, 4  ;;  %s76_s20 = sshll.u32 %s1050_s19, 4  ;;  %s49_s17 = int_to_ptr.vmem [resolvable:$true] %s48_s17  ;;  %s77_s20 = int_to_ptr.vmem [resolvable:$true] %s76_s20 }
  0x38   :  { %s922_s23 = scalar_lea.hbm %s1279_s2, 2048 }
  0x39   :  { %p923_p10 = scmp.ne.s32.totalorder %s1279_s2, %s922_s23  ;;  %p926_p11 = scmp.lt.u32.totalorder %s922_s23, %s1279_s2 }
  0x3b   :  { %p928_p12 = pnand %p926_p11, %p923_p10 }
  0x3d   :  { %931 = shalt.err (!%p928_p12)
}
  0x3e   :  { %s932_s0 = scalar_lea.vmem %s49_s17, 2048  ;;  %p937_p0 = scmp.lt.s32.totalorder %s49_s17, %s49_s17 }
  0x3f   :  { %p933_p13 = scmp.ne.s32.totalorder %s49_s17, %s932_s0  ;;  %p938_p1 = scmp.lt.s32.totalorder %s932_s0, %s932_s0 }
  0x41   :  { %p939_p2 = por %p938_p1, %p937_p0 }
  0x43   :  { %p940_p3 = pnand %p939_p2, %p933_p13 }
  0x45   :  { %943 = shalt.err (!%p940_p3)
}
  0x46   :  { %54 = dma.hbm_to_vmem [thread:$0]  %s1279_s2, 2048, %s49_s17, [#allocation6], %s1047_s18, %s1047_s18, %s1048_s22  }
  0x47   :  { %s944_s14 = scalar_lea.hbm %s1283_s6, 2048 }
  0x48   :  { %p945_p4 = scmp.ne.s32.totalorder %s1283_s6, %s944_s14  ;;  %p948_p5 = scmp.lt.u32.totalorder %s944_s14, %s1283_s6 }
  0x4a   :  { %p950_p6 = pnand %p948_p5, %p945_p4 }
  0x4c   :  { %953 = shalt.err (!%p950_p6)
}
  0x4d   :  { %s954_s19 = scalar_lea.vmem %s77_s20, 2048  ;;  %p959_p8 = scmp.lt.s32.totalorder %s77_s20, %s77_s20 }
  0x4e   :  { %p955_p7 = scmp.ne.s32.totalorder %s77_s20, %s954_s19  ;;  %p960_p9 = scmp.lt.s32.totalorder %s954_s19, %s954_s19 }
  0x50   :  { %p961_p10 = por %p960_p9, %p959_p8 }
  0x52   :  { %p962_p11 = pnand %p961_p10, %p955_p7 }
  0x54   :  { %965 = shalt.err (!%p962_p11)
}
  0x55   :  { %82 = dma.hbm_to_vmem [thread:$0]  %s1283_s6, 2048, %s77_s20, [#allocation9], %s1047_s18, %s1047_s18, %s1048_s22  }
  0x56   :  { %s1051_s21 = smov [#allocation11]   ;;  %s966_s25 = scalar_lea.hbm %s1285_s8, 2048 }
  0x57   :  { %s90_s1 = sshll.u32 %s1051_s21, 4  ;;  %p967_p12 = scmp.ne.s32.totalorder %s1285_s8, %s966_s25  ;;  %s91_s1 = int_to_ptr.vmem [resolvable:$true] %s90_s1 }
  0x58   :  { %p970_p13 = scmp.lt.u32.totalorder %s966_s25, %s1285_s8 }
  0x5a   :  { %p972_p0 = pnand %p970_p13, %p967_p12 }
  0x5c   :  { %975 = shalt.err (!%p972_p0)
}
  0x5d   :  { %s976_s28 = scalar_lea.vmem %s91_s1, 2048  ;;  %p981_p2 = scmp.lt.s32.totalorder %s91_s1, %s91_s1 }
  0x5e   :  { %p977_p1 = scmp.ne.s32.totalorder %s91_s1, %s976_s28  ;;  %p982_p3 = scmp.lt.s32.totalorder %s976_s28, %s976_s28 }
  0x60   :  { %p983_p4 = por %p982_p3, %p981_p2 }
  0x62   :  { %p984_p5 = pnand %p983_p4, %p977_p1 }
  0x64   :  { %987 = shalt.err (!%p984_p5)
}
  0x65   :  { %96 = dma.hbm_to_vmem [thread:$0]  %s1285_s8, 2048, %s91_s1, [#allocation12], %s1047_s18, %s1047_s18, %s1048_s22  }
  0x66   :  { %1032 = dma.done.wait [#allocation3], 128  }
  0x67   :  { %1033 = vsyncadd [#allocation3], 4294967168 }
  0x68   :  { %1034 = dma.done.wait [#allocation6], 2176  }
  0x69   :  { %1035 = vsyncadd [#allocation6], 4294965120 }
  0x6a   :  { %1036 = dma.done.wait [#allocation9], 4096  }
  0x6b   :  { %1037 = vsyncadd [#allocation9], 4294963200 }
  0x6c   :  { %1038 = dma.done.wait [#allocation12], 2048  }
  0x6d   :  { %1039 = vsyncadd [#allocation12], 4294965248  ;;  %v1052_v0 = vmov 0.0|0.0   ;;  %vm1053_vm0 = vmmov 0   ;;  %v1054_v1 = vmov 0.0   ;;  %v118_v2 = vld [vmem:[#allocation7] sm:$0xff] }
  0x6e   :  { %743 = vmatprep.subr.bf16.mxu0 %v1052_v0  ;;  %635 = vmatprep.mubr.msk.f32.mxu0 %vm1053_vm0, %v1054_v1  ;;  %v119_v3 = vld [vmem:[#allocation7 + $0x8] sm:$0xff]  ;;  %v120_v4 = vld [vmem:[#allocation7 + $0x10] sm:$0xff]  ;;  %v121_v6 = vld [vmem:[#allocation7 + $0x18] sm:$0xff]  ;;  %s1055_s12 = smov [#allocation14]  }
  0x6f   :  { %767 = vmatprep.subr.bf16.mxu1 %v1052_v0  ;;  %670 = vmatprep.mubr.msk.f32.mxu1 %vm1053_vm0, %v1054_v1  ;;  %v744_v5 = vpack.c.bf16 %v119_v3, %v118_v2  ;;  %v747_v7 = vpack.c.bf16 %v121_v6, %v120_v4  ;;  %v122_v8 = vld [vmem:[#allocation7 + $0x20] sm:$0xff]  ;;  %v123_v9 = vld [vmem:[#allocation7 + $0x28] sm:$0xff]  ;;  %v213_v12 = vld [vmem:[#allocation8 + $0x10] sm:$0xff]  ;;  %s515_s14 = sshll.u32 %s1055_s12, 4  ;;  %s516_s14 = int_to_ptr.vmem [resolvable:$true] %s515_s14 }
  0x70   :  { %v211_v10 = vld [vmem:[#allocation8] sm:$0xff]  ;;  %v212_v11 = vld [vmem:[#allocation8 + $0x8] sm:$0xff]  ;;  %v214_v13 = vld [vmem:[#allocation8 + $0x18] sm:$0xff]  ;;  %v750_v14 = vpack.c.bf16 %v123_v9, %v122_v8  ;;  %s988_s15 = scalar_lea.vmem %s516_s14, 128  ;;  %p993_p7 = scmp.lt.s32.totalorder %s516_s14, %s516_s14 }
  0x71   :  { %745 = vmatpush3.bf16.msra.mxu0 %v744_v5  ;;  %v768_v15 = vpack.c.bf16 %v212_v11, %v211_v10  ;;  %v124_v16 = vld [vmem:[#allocation7 + $0x30] sm:$0xff]  ;;  %v125_v17 = vld [vmem:[#allocation7 + $0x38] sm:$0xff]  ;;  %v771_v18 = vpack.c.bf16 %v214_v13, %v213_v12  ;;  %v215_v19 = vld [vmem:[#allocation8 + $0x20] sm:$0xff]  ;;  %p989_p6 = scmp.ne.s32.totalorder %s516_s14, %s988_s15  ;;  %p994_p8 = scmp.lt.s32.totalorder %s988_s15, %s988_s15 }
  0x72   :  { %746 = vmatprep.subr.bf16.mxu0 %v1052_v0  ;;  %v216_v20 = vld [vmem:[#allocation8 + $0x28] sm:$0xff]  ;;  %v753_v21 = vpack.c.bf16 %v125_v17, %v124_v16  ;;  %v126_v22 = vld [vmem:[#allocation7 + $0x40] sm:$0xff]  ;;  %v217_v25 = vld [vmem:[#allocation8 + $0x30] sm:$0xff] }
  0x73   :  { %769 = vmatpush3.bf16.msra.mxu1 %v768_v15  ;;  %v127_v23 = vld [vmem:[#allocation7 + $0x48] sm:$0xff]  ;;  %v774_v24 = vpack.c.bf16 %v216_v20, %v215_v19  ;;  %v218_v26 = vld [vmem:[#allocation8 + $0x38] sm:$0xff]  ;;  %v128_v28 = vld [vmem:[#allocation7 + $0x50] sm:$0xff]  ;;  %p995_p9 = por %p994_p8, %p993_p7 }
  0x74   :  { %770 = vmatprep.subr.bf16.mxu1 %v1052_v0  ;;  %v756_v27 = vpack.c.bf16 %v127_v23, %v126_v22  ;;  %v129_v29 = vld [vmem:[#allocation7 + $0x58] sm:$0xff]  ;;  %v777_v30 = vpack.c.bf16 %v218_v26, %v217_v25  ;;  %v219_v31 = vld [vmem:[#allocation8 + $0x40] sm:$0xff]  ;;  %v220_v32 = vld [vmem:[#allocation8 + $0x48] sm:$0xff] }
  0x75   :  { %748 = vmatpush3.bf16.msra.mxu0 %v747_v7  ;;  %v759_v33 = vpack.c.bf16 %v129_v29, %v128_v28  ;;  %v130_v34 = vld [vmem:[#allocation7 + $0x60] sm:$0xff]  ;;  %v131_v35 = vld [vmem:[#allocation7 + $0x68] sm:$0xff]  ;;  %v780_v36 = vpack.c.bf16 %v220_v32, %v219_v31  ;;  %v221_v37 = vld [vmem:[#allocation8 + $0x50] sm:$0xff]  ;;  %p996_p10 = pnand %p995_p9, %p989_p6 }
  0x76   :  { %749 = vmatprep.subr.bf16.mxu0 %v1052_v0  ;;  %v222_v38 = vld [vmem:[#allocation8 + $0x58] sm:$0xff]  ;;  %v762_v39 = vpack.c.bf16 %v131_v35, %v130_v34  ;;  %v132_v40 = vld [vmem:[#allocation7 + $0x70] sm:$0xff]  ;;  %v223_v43 = vld [vmem:[#allocation8 + $0x60] sm:$0xff] }
  0x77   :  { %772 = vmatpush3.bf16.msra.mxu1 %v771_v18  ;;  %v133_v41 = vld [vmem:[#allocation7 + $0x78] sm:$0xff]  ;;  %v783_v42 = vpack.c.bf16 %v222_v38, %v221_v37  ;;  %v224_v44 = vld [vmem:[#allocation8 + $0x68] sm:$0xff]  ;;  %v117_v47 = vld [vmem:[#allocation2] sm:$0xff] }
  0x78   :  { %773 = vmatprep.subr.bf16.mxu1 %v1052_v0  ;;  %v765_v45 = vpack.c.bf16 %v133_v41, %v132_v40  ;;  %v786_v46 = vpack.c.bf16 %v224_v44, %v223_v43  ;;  %v225_v48 = vld [vmem:[#allocation8 + $0x70] sm:$0xff]  ;;  %v226_v49 = vld [vmem:[#allocation8 + $0x78] sm:$0xff]  ;;  %v306_v51 = vld [vmem:[#allocation10] sm:$0xff] }
  0x79   :  { %751 = vmatpush3.bf16.msra.mxu0 %v750_v14  ;;  %v789_v50 = vpack.c.bf16 %v226_v49, %v225_v48  ;;  %v307_v52 = vld [vmem:[#allocation10 + $0x8] sm:$0xff]  ;;  %v308_v53 = vld [vmem:[#allocation10 + $0x10] sm:$0xff]  ;;  %v309_v55 = vld [vmem:[#allocation10 + $0x18] sm:$0xff] }
  0x7a   :  { %752 = vmatprep.subr.bf16.mxu0 %v1052_v0  ;;  %v792_v54 = vpack.c.bf16 %v307_v52, %v306_v51  ;;  %v795_v56 = vpack.c.bf16 %v309_v55, %v308_v53  ;;  %v310_v57 = vld [vmem:[#allocation10 + $0x20] sm:$0xff]  ;;  %v311_v58 = vld [vmem:[#allocation10 + $0x28] sm:$0xff]  ;;  %v312_v60 = vld [vmem:[#allocation10 + $0x30] sm:$0xff] }
  0x7b   :  { %775 = vmatpush3.bf16.msra.mxu1 %v774_v24  ;;  %v798_v59 = vpack.c.bf16 %v311_v58, %v310_v57  ;;  %v313_v61 = vld [vmem:[#allocation10 + $0x38] sm:$0xff]  ;;  %v314_v63 = vld [vmem:[#allocation10 + $0x40] sm:$0xff]  ;;  %v315_v2 = vld [vmem:[#allocation10 + $0x48] sm:$0xff] }
  0x7c   :  { %776 = vmatprep.subr.bf16.mxu1 %v1052_v0  ;;  %v801_v62 = vpack.c.bf16 %v313_v61, %v312_v60  ;;  %v804_v3 = vpack.c.bf16 %v315_v2, %v314_v63  ;;  %v316_v4 = vld [vmem:[#allocation10 + $0x50] sm:$0xff]  ;;  %v317_v5 = vld [vmem:[#allocation10 + $0x58] sm:$0xff]  ;;  %v318_v7 = vld [vmem:[#allocation10 + $0x60] sm:$0xff] }
  0x7d   :  { %754 = vmatpush3.bf16.msra.mxu0 %v753_v21  ;;  %v807_v6 = vpack.c.bf16 %v317_v5, %v316_v4  ;;  %v319_v8 = vld [vmem:[#allocation10 + $0x68] sm:$0xff]  ;;  %v531_v10 = vld [vmem:[%s1280_s3] ss:$0 sm:$0xff]  ;;  %v321_v15 = vld [vmem:[#allocation10 + $0x78] sm:$0xff] }
  0x7e   :  { %755 = vmatprep.subr.bf16.mxu0 %v1052_v0  ;;  %v810_v9 = vpack.c.bf16 %v319_v8, %v318_v7  ;;  %v320_v14 = vld [vmem:[#allocation10 + $0x70] sm:$0xff]  ;;  %v400_v17 = vld [vmem:[#allocation11] sm:$0xff]  ;;  %v401_v18 = vld [vmem:[#allocation11 + $0x8] sm:$0xff] }
  0x7f   :  { %778 = vmatpush3.bf16.msra.mxu1 %v777_v30  ;;  %v813_v16 = vpack.c.bf16 %v321_v15, %v320_v14  ;;  %v402_v19 = vld [vmem:[#allocation11 + $0x10] sm:$0xff]  ;;  %v816_v20 = vpack.c.bf16 %v401_v18, %v400_v17  ;;  %v403_v21 = vld [vmem:[#allocation11 + $0x18] sm:$0xff]  ;;  %v404_v23 = vld [vmem:[#allocation11 + $0x20] sm:$0xff] }
  0x80   :  { %779 = vmatprep.subr.bf16.mxu1 %v1052_v0  ;;  %v819_v22 = vpack.c.bf16 %v403_v21, %v402_v19  ;;  %v405_v24 = vld [vmem:[#allocation11 + $0x28] sm:$0xff]  ;;  %v407_v26 = vld [vmem:[#allocation11 + $0x38] sm:$0xff]  ;;  %v408_v28 = vld [vmem:[#allocation11 + $0x40] sm:$0xff] }
  0x81   :  { %757 = vmatpush3.bf16.msra.mxu0 %v756_v27  ;;  %v822_v25 = vpack.c.bf16 %v405_v24, %v404_v23  ;;  %v409_v29 = vld [vmem:[#allocation11 + $0x48] sm:$0xff]  ;;  %v532_v31 = vld [vmem:[%s1282_s5] ss:$0 sm:$0xff]  ;;  %v411_v38 = vld [vmem:[#allocation11 + $0x58] sm:$0xff] }
  0x82   :  { %758 = vmatprep.subr.bf16.mxu0 %v1052_v0  ;;  %v828_v30 = vpack.c.bf16 %v409_v29, %v408_v28  ;;  %v410_v37 = vld [vmem:[#allocation11 + $0x50] sm:$0xff]  ;;  %v412_v40 = vld [vmem:[#allocation11 + $0x60] sm:$0xff]  ;;  %v413_v41 = vld [vmem:[#allocation11 + $0x68] sm:$0xff] }
  0x83   :  { %781 = vmatpush3.bf16.msra.mxu1 %v780_v36  ;;  %v414_v43 = vld [vmem:[#allocation11 + $0x70] sm:$0xff]  ;;  %v415_v44 = vld [vmem:[#allocation11 + $0x78] sm:$0xff] }
  0x84   :  { %782 = vmatprep.subr.bf16.mxu1 %v1052_v0 }
  0x85   :  { %760 = vmatpush3.bf16.msra.mxu0 %v759_v33  ;;  %v304_v33 = vld [vmem:[#allocation5] sm:$0xff] }
  0x86   :  { %761 = vmatprep.subr.bf16.mxu0 %v1052_v0 }
  0x87   :  { %784 = vmatpush3.bf16.msra.mxu1 %v783_v42  ;;  %v834_v42 = vpack.c.bf16 %v413_v41, %v412_v40 }
  0x88   :  { %785 = vmatprep.subr.bf16.mxu1 %v1052_v0 }
  0x89   :  { %763 = vmatpush3.bf16.msra.mxu0 %v762_v39  ;;  %v831_v39 = vpack.c.bf16 %v411_v38, %v410_v37 }
  0x8a   :  { %764 = vmatprep.subr.bf16.mxu0 %v1052_v0 }
  0x8b   :  { %787 = vmatpush3.bf16.msra.mxu1 %v786_v46  ;;  %v533_v46 = vld [vmem:[%s1284_s7] ss:$0 sm:$0xff] }
  0x8c   :  { %788 = vmatprep.subr.bf16.mxu1 %v1052_v0 }
  0x8d   :  { %766 = vmatpush3.bf16.msra.mxu0 %v765_v45  ;;  %v837_v45 = vpack.c.bf16 %v415_v44, %v414_v43 }
  0x8e   :  { %791 = vmatprep.subr.bf16.mxu0 %v1052_v0 }
  0x8f   :  { %790 = vmatpush3.bf16.msra.mxu1 %v789_v50 }
  0x90   :  { %636 = vmatmul.mubr.f32.vlgmr.msra.gmra.mrb[0].mxu0 %v117_v47  ;;  %815 = vmatprep.subr.bf16.mxu1 %v1052_v0 }
  0x91   :  { %705 = vmatprep.mubr.msk.f32.mxu0 %vm1053_vm0, %v1054_v1  ;;  %793 = vmatpush3.bf16.msra.mxu0 %v792_v54 }
  0x92   :  { %794 = vmatprep.subr.bf16.mxu0 %v1052_v0 }
  0x95   :  { %796 = vmatpush3.bf16.msra.mxu0 %v795_v56 }
  0x96   :  { %797 = vmatprep.subr.bf16.mxu0 %v1052_v0 }
  0x99   :  { %799 = vmatpush3.bf16.msra.mxu0 %v798_v59 }
  0x9a   :  { %800 = vmatprep.subr.bf16.mxu0 %v1052_v0 }
  0x9d   :  { %802 = vmatpush3.bf16.msra.mxu0 %v801_v62 }
  0x9e   :  { %803 = vmatprep.subr.bf16.mxu0 %v1052_v0 }
  0xa1   :  { %805 = vmatpush3.bf16.msra.mxu0 %v804_v3 }
  0xa2   :  { %806 = vmatprep.subr.bf16.mxu0 %v1052_v0 }
  0xa5   :  { %808 = vmatpush3.bf16.msra.mxu0 %v807_v6 }
  0xa6   :  { %809 = vmatprep.subr.bf16.mxu0 %v1052_v0 }
  0xa9   :  { %811 = vmatpush3.bf16.msra.mxu0 %v810_v9 }
  0xaa   :  { %812 = vmatprep.subr.bf16.mxu0 %v1052_v0 }
  0xad   :  { %814 = vmatpush3.bf16.msra.mxu0 %v813_v16 }
 0x163   :  { %v207_v11 = vpop.f32.mrb[0].mxu0 }
 0x164   :  { %v208_v12 = vadd.f32 %v531_v10, %v207_v11  ;;  %v637_v13 = vpop.f32.mrb[1].mxu0 }
 0x166   :  { %671 = vmatmul.mubr.f32.vlgmr.msra.gmra.mrb[0].mxu1 %v208_v12 }
 0x167   :  { %740 = vmatprep.mubr.msk.f32.mxu1 %vm1053_vm0, %v1054_v1  ;;  %817 = vmatpush3.bf16.msra.mxu1 %v816_v20  ;;  %v406_v1 = vld [vmem:[#allocation11 + $0x30] sm:$0xff] }
 0x168   :  { %818 = vmatprep.subr.bf16.mxu1 %v1052_v0  ;;  %v825_v27 = vpack.c.bf16 %v407_v26, %v406_v1 }
 0x16b   :  { %820 = vmatpush3.bf16.msra.mxu1 %v819_v22 }
 0x16c   :  { %821 = vmatprep.subr.bf16.mxu1 %v1052_v0 }
 0x16f   :  { %823 = vmatpush3.bf16.msra.mxu1 %v822_v25 }
 0x170   :  { %824 = vmatprep.subr.bf16.mxu1 %v1052_v0 }
 0x173   :  { %826 = vmatpush3.bf16.msra.mxu1 %v825_v27 }
 0x174   :  { %827 = vmatprep.subr.bf16.mxu1 %v1052_v0 }
 0x177   :  { %829 = vmatpush3.bf16.msra.mxu1 %v828_v30 }
 0x178   :  { %830 = vmatprep.subr.bf16.mxu1 %v1052_v0 }
 0x17b   :  { %832 = vmatpush3.bf16.msra.mxu1 %v831_v39 }
 0x17c   :  { %833 = vmatprep.subr.bf16.mxu1 %v1052_v0 }
 0x17f   :  { %835 = vmatpush3.bf16.msra.mxu1 %v834_v42 }
 0x180   :  { %836 = vmatprep.subr.bf16.mxu1 %v1052_v0 }
 0x183   :  { %838 = vmatpush3.bf16.msra.mxu1 %v837_v45 }
 0x239   :  { %v300_v32 = vpop.f32.mrb[0].mxu1 }
 0x23a   :  { %v301_v34 = vadd.f32 %v532_v31, %v300_v32  ;;  %v672_v35 = vpop.f32.mrb[1].mxu1 }
 0x23c   :  { %v305_v36 = vmul.f32 %v304_v33, %v301_v34  ;;  %498 = vst [vmem:[#allocation14] sm:$0xff] %v301_v34 }
 0x23e   :  { %706 = vmatmul.mubr.f32.vlgmr.msra.gmra.mrb[2].mxu0 %v305_v36 }
 0x311   :  { %v395_v47 = vpop.f32.mrb[2].mxu0 }
 0x312   :  { %v396_v48 = vadd.f32 %v533_v46, %v395_v47  ;;  %v707_v49 = vpop.f32.mrb[3].mxu0 }
 0x314   :  { %852 = vtanh.f32 %v396_v48 }
 0x31e   :  { %v853_v50 = vpop.eup %852 }
 0x31f   :  { %741 = vmatmul.mubr.f32.vlgmr.msra.gmra.mrb[2].mxu1 %v853_v50 }
 0x320   :  { %999 = shalt.err (!%p996_p10)
}
 0x321   :  { %s1000_s7 = scalar_lea.hbm %s1288_s11, 128 }
 0x322   :  { %p1001_p11 = scmp.ne.s32.totalorder %s1288_s11, %s1000_s7  ;;  %p1004_p12 = scmp.lt.u32.totalorder %s1000_s7, %s1288_s11 }
 0x324   :  { %p1006_p13 = pnand %p1004_p12, %p1001_p11 }
 0x326   :  { %1009 = shalt.err (!%p1006_p13)
}
 0x327   :  { %518 = dma.vmem_to_hbm [thread:$0]  %s516_s14, 128, %s1288_s11, [#allocation15]   ;;  %v534_v0 = vld [vmem:[%s1286_s9] ss:$0 sm:$0xff] }
 0x328   :  { %s1056_s25 = smov [#allocation13]  }
 0x329   :  { %s505_s26 = sshll.u32 %s1056_s25, 4  ;;  %s506_s26 = int_to_ptr.vmem [resolvable:$true] %s505_s26 }
 0x32a   :  { %s1010_s27 = scalar_lea.vmem %s506_s26, 128  ;;  %p1015_p1 = scmp.lt.s32.totalorder %s506_s26, %s506_s26 }
 0x32b   :  { %p1011_p0 = scmp.ne.s32.totalorder %s506_s26, %s1010_s27  ;;  %p1016_p2 = scmp.lt.s32.totalorder %s1010_s27, %s1010_s27 }
 0x32d   :  { %p1017_p3 = por %p1016_p2, %p1015_p1 }
 0x32f   :  { %p1018_p4 = pnand %p1017_p3, %p1011_p0 }
 0x3f2   :  { %v489_v51 = vpop.f32.mrb[2].mxu1 }
 0x3f3   :  { %v490_v52 = vadd.f32 %v534_v0, %v489_v51  ;;  %v742_v53 = vpop.f32.mrb[3].mxu1 }
 0x3f5   :  { %v493_v54 = vmul.f32 0.5, %v490_v52 }
 0x3f7   :  { %854 = vtanh.f32 %v493_v54 }
 0x401   :  { %v855_v55 = vpop.eup %854 }
 0x402   :  { %v495_v56 = vmul.f32 0.5, %v855_v55 }
 0x404   :  { %v496_v57 = vadd.f32 0.5, %v495_v56 }
 0x406   :  { %497 = vst [vmem:[#allocation13] sm:$0xff] %v496_v57 }
 0x407   :  { %1021 = shalt.err (!%p1018_p4)
}
 0x408   :  { %s1022_s0 = scalar_lea.hbm %s1287_s10, 128 }
 0x409   :  { %p1023_p5 = scmp.ne.s32.totalorder %s1287_s10, %s1022_s0  ;;  %p1026_p6 = scmp.lt.u32.totalorder %s1022_s0, %s1287_s10 }
 0x40b   :  { %p1028_p7 = pnand %p1026_p6, %p1023_p5 }
 0x40d   :  { %1031 = shalt.err (!%p1028_p7)
}
 0x40e   :  { %508 = dma.vmem_to_hbm [thread:$0]  %s506_s26, 128, %s1287_s10, [#allocation4]  }
 0x40f   :  { %1040 = dma.done.wait [#allocation4], 128  }
 0x410   :  { %1041 = vsyncadd [#allocation4], 4294967168 }
 0x411   :  { %1042 = dma.done.wait [#allocation15], 128  }
 0x412   :  { %1043 = vsyncadd [#allocation15], 4294967168 }
 0x413   :  { %525 = vsyncpa [#allocation3], 1 }
 0x414   :  { %526 = vsyncpa [#allocation6], 1 }
 0x415   :  { %527 = vsyncpa [#allocation9], 1 }
 0x416   :  { %528 = vsyncpa [#allocation12], 1 }
 0x417   :  { %529 = vsyncpa [#allocation4], 1 }
 0x418   :  { %530 = vsyncpa [#allocation15], 1 }

</bundles_post_ra>
